<compile_context>
chip_gen: v7x
topology: tpu7x:2x2x1
jax: 0.10.0
libtpu: 0.0.40
codegen_flags: <defaults>
</compile_context>

<pallas_src>
import jax
import jax.numpy as jnp
from jax.experimental import pallas as pl
from jax.experimental.pallas import tpu as pltpu


# Contract the last dim of both operands: A[m,k] . B[n,k] -> [m,n]  (NT form).
_NT_DIMS = (((1,), (1,)), ((), ()))

_DEFAULT_TB = 8192                 # batch rows per grid step (multiple of 128)
_VMEM_LIMIT = 32 * 1024 * 1024     # explicit scoped-VMEM limit (safe on v5e/v6e/v7x)


def mlp_kernel(x_ref, w1_ref, b1_ref, w2_ref, b2_ref,
               w3_ref, b3_ref, w4_ref, b4_ref, o_ref):
    # Layer 1: W1 [32, F] x X [tb, F] (contract F) -> (32, tb); batch on lanes.
    h = jax.lax.dot_general(w1_ref[...], x_ref[...], _NT_DIMS,
                            preferred_element_type=jnp.float32)
    h = jnp.maximum(h + b1_ref[...], 0.0)
    # Layer 2: (16, 32) @ (32, tb) -> (16, tb)
    h = jnp.dot(w2_ref[...], h, preferred_element_type=jnp.float32)
    h = jnp.maximum(h + b2_ref[...], 0.0)
    # Layer 3: (4, 16) @ (16, tb) -> (4, tb)
    h = jnp.dot(w3_ref[...], h, preferred_element_type=jnp.float32)
    h = jnp.maximum(h + b3_ref[...], 0.0)
    # Layer 4: (1, 4) @ (4, tb) -> (1, tb); lane-dense output slab.
    o = jnp.dot(w4_ref[...], h, preferred_element_type=jnp.float32)
    o_ref[...] = (o + b4_ref[...]).astype(o_ref.dtype)


def my_model_forward(x, params, *, tb=None):
    """Fused MLP forward.

    x: [batch, input_size] float32.
    params: ((w1, b1), ..., (w4, b4)) in PyTorch-native layout:
            w: [out_features, in_features], b: [out_features].
    Returns [batch, 1] float32, matching MyModel.forward.
    """
    (w1, b1), (w2, b2), (w3, b3), (w4, b4) = params
    B, F = x.shape
    assert w1.shape == (32, F) and w2.shape == (16, 32)
    assert w3.shape == (4, 16) and w4.shape == (1, 4)

    # Biases as [out, 1] columns so they broadcast along the lane (batch) axis.
    b1c = jnp.reshape(b1, (32, 1))
    b2c = jnp.reshape(b2, (16, 1))
    b3c = jnp.reshape(b3, (4, 1))
    b4c = jnp.reshape(b4, (1, 1))

    # Batch-tile selection:
    #   - big enough that the x-tile DMA dwarfs the ~0.35us per-step overhead,
    #   - small enough that the lane-padded (tb, 128)-f32 x tile (double
    #     buffered) + (32|16|8|8, tb) intermediates fit in scoped VMEM,
    #   - multiple of 128 when tiled (lane-dense (1, tb) output blocks,
    #     sublane-aligned (tb, F) input blocks).
    if tb is None:
        tb = _DEFAULT_TB
    if tb >= B:
        tb = B                                   # single tile: block == array
    else:
        tb = max(128, (tb // 128) * 128)
        if tb >= B:
            tb = B
    grid = (pl.cdiv(B, tb),)                     # partial last block is masked

    def full_spec(shape):
        # Full-array block, same block every grid step (not re-fetched).
        return pl.BlockSpec(shape, lambda i: (0,) * len(shape))

    out_t = pl.pallas_call(
        mlp_kernel,
        out_shape=jax.ShapeDtypeStruct((1, B), jnp.float32),
        grid_spec=pltpu.PrefetchScalarGridSpec(
            num_scalar_prefetch=0,
            grid=grid,
            in_specs=[
                pl.BlockSpec((tb, F), lambda i: (i, 0)),     # x: tiled on batch
                full_spec(w1.shape), full_spec(b1c.shape),
                full_spec(w2.shape), full_spec(b2c.shape),
                full_spec(w3.shape), full_spec(b3c.shape),
                full_spec(w4.shape), full_spec(b4c.shape),
            ],
            out_specs=pl.BlockSpec((1, tb), lambda i: (0, i)),  # lane-dense out
        ),
        compiler_params=pltpu.CompilerParams(
            dimension_semantics=("parallel",),   # megacore sharding on v7x
            vmem_limit_bytes=_VMEM_LIMIT,
        ),
    )(x, w1, b1c, w2, b2c, w3, b3c, w4, b4c)

    # Back to the module's [batch, 1] output layout (cheap reshape in XLA).
    return out_t.reshape(B, 1)


def init_params(key, input_size):
    """Deterministic init mimicking torch.nn.Linear (uniform +-1/sqrt(fan_in)).

    Weights are in PyTorch-native [out_features, in_features] layout,
    biases are [out_features].
    """
    dims = [(input_size, 32), (32, 16), (16, 4), (4, 1)]
    params = []
    for fan_in, fan_out in dims:
        key, kw, kb = jax.random.split(key, 3)
        bound = 1.0 / (fan_in ** 0.5)
        w = jax.random.uniform(kw, (fan_out, fan_in), jnp.float32, -bound, bound)
        b = jax.random.uniform(kb, (fan_out,), jnp.float32, -bound, bound)
        params.append((w, b))
    return params


if __name__ == "__main__":
    key = jax.random.PRNGKey(0)
    k_x, k_p = jax.random.split(key)

    batch, input_size = 8, 16
    x = jax.random.normal(k_x, (batch, input_size), jnp.float32)
    params = init_params(k_p, input_size)

    out = jax.block_until_ready(my_model_forward(x, params))

    # Pure-JAX reference (PyTorch semantics: x @ W.T + b).
    def ref(x, params):
        (w1, b1), (w2, b2), (w3, b3), (w4, b4) = params
        h = jnp.maximum(x @ w1.T + b1, 0.0)
        h = jnp.maximum(h @ w2.T + b2, 0.0)
        h = jnp.maximum(h @ w3.T + b3, 0.0)
        return h @ w4.T + b4

    expected = ref(x, params)
    assert out.shape == (batch, 1), out.shape
    assert jnp.allclose(out, expected, atol=1e-5, rtol=1e-5), (
        float(jnp.max(jnp.abs(out - expected))))

    print("KERNEL_OK")
</pallas_src>

<mosaic_0001>
module attributes {stable_mosaic.version = 11 : i64} {
  func.func @mlp_kernel(%arg0: i32, %arg1: memref<8x16xf32, #tpu.memory_space<vmem>>, %arg2: memref<32x16xf32, #tpu.memory_space<vmem>>, %arg3: memref<32x1xf32, #tpu.memory_space<vmem>>, %arg4: memref<16x32xf32, #tpu.memory_space<vmem>>, %arg5: memref<16x1xf32, #tpu.memory_space<vmem>>, %arg6: memref<4x16xf32, #tpu.memory_space<vmem>>, %arg7: memref<4x1xf32, #tpu.memory_space<vmem>>, %arg8: memref<1x4xf32, #tpu.memory_space<vmem>>, %arg9: memref<1x1xf32, #tpu.memory_space<vmem>>, %arg10: memref<1x8xf32, #tpu.memory_space<vmem>>) attributes {dimension_semantics = [#tpu.dimension_semantics<parallel>], iteration_bounds = array<i64: 1>, scalar_prefetch = 0 : i64, scratch_operands = 0 : i64, tpu.core_type = #tpu.core_type<tc>, window_params = [{transform_indices = @transform_0, window_bounds = array<i64: 8, 16>}, {pipeline_mode = #tpu.pipeline_mode<synchronous>, transform_indices = @transform_1, window_bounds = array<i64: 32, 16>}, {pipeline_mode = #tpu.pipeline_mode<synchronous>, transform_indices = @transform_2, window_bounds = array<i64: 32, 1>}, {pipeline_mode = #tpu.pipeline_mode<synchronous>, transform_indices = @transform_3, window_bounds = array<i64: 16, 32>}, {pipeline_mode = #tpu.pipeline_mode<synchronous>, transform_indices = @transform_4, window_bounds = array<i64: 16, 1>}, {pipeline_mode = #tpu.pipeline_mode<synchronous>, transform_indices = @transform_5, window_bounds = array<i64: 4, 16>}, {pipeline_mode = #tpu.pipeline_mode<synchronous>, transform_indices = @transform_6, window_bounds = array<i64: 4, 1>}, {pipeline_mode = #tpu.pipeline_mode<synchronous>, transform_indices = @transform_7, window_bounds = array<i64: 1, 4>}, {pipeline_mode = #tpu.pipeline_mode<synchronous>, transform_indices = @transform_8, window_bounds = array<i64: 1, 1>}, {transform_indices = @transform_9, window_bounds = array<i64: 1, 8>}]} {
    %c0 = arith.constant 0 : index
    %c0_0 = arith.constant 0 : index
    %0 = vector.load %arg2[%c0, %c0_0] : memref<32x16xf32, #tpu.memory_space<vmem>>, vector<32x16xf32>
    %c0_1 = arith.constant 0 : index
    %c0_2 = arith.constant 0 : index
    %1 = vector.load %arg1[%c0_1, %c0_2] : memref<8x16xf32, #tpu.memory_space<vmem>>, vector<8x16xf32>
    %cst = arith.constant dense<0.000000e+00> : vector<32x8xf32>
    %2 = tpu.matmul %0, %1, %cst {dimension_numbers = #tpu.dot_dimension_numbers<[1], [1], [0], [0], [0, 0, 1, 0], [], []>} : vector<32x16xf32>, vector<8x16xf32>, vector<32x8xf32> -> vector<32x8xf32>
    %c0_3 = arith.constant 0 : index
    %c0_4 = arith.constant 0 : index
    %3 = vector.load %arg3[%c0_3, %c0_4] : memref<32x1xf32, #tpu.memory_space<vmem>>, vector<32x1xf32>
    %4 = vector.broadcast %3 : vector<32x1xf32> to vector<32x8xf32>
    %5 = arith.addf %2, %4 : vector<32x8xf32>
    %cst_5 = arith.constant 0.000000e+00 : f32
    %6 = vector.broadcast %cst_5 : f32 to vector<32x8xf32>
    %7 = arith.maximumf %5, %6 : vector<32x8xf32>
    %c0_6 = arith.constant 0 : index
    %c0_7 = arith.constant 0 : index
    %8 = vector.load %arg4[%c0_6, %c0_7] : memref<16x32xf32, #tpu.memory_space<vmem>>, vector<16x32xf32>
    %cst_8 = arith.constant dense<0.000000e+00> : vector<16x8xf32>
    %9 = tpu.matmul %8, %7, %cst_8 {dimension_numbers = #tpu.dot_dimension_numbers<[1], [0], [0], [1], [0, 0, 1, 1], [], []>} : vector<16x32xf32>, vector<32x8xf32>, vector<16x8xf32> -> vector<16x8xf32>
    %c0_9 = arith.constant 0 : index
    %c0_10 = arith.constant 0 : index
    %10 = vector.load %arg5[%c0_9, %c0_10] : memref<16x1xf32, #tpu.memory_space<vmem>>, vector<16x1xf32>
    %11 = vector.broadcast %10 : vector<16x1xf32> to vector<16x8xf32>
    %12 = arith.addf %9, %11 : vector<16x8xf32>
    %cst_11 = arith.constant 0.000000e+00 : f32
    %13 = vector.broadcast %cst_11 : f32 to vector<16x8xf32>
    %14 = arith.maximumf %12, %13 : vector<16x8xf32>
    %c0_12 = arith.constant 0 : index
    %c0_13 = arith.constant 0 : index
    %15 = vector.load %arg6[%c0_12, %c0_13] : memref<4x16xf32, #tpu.memory_space<vmem>>, vector<4x16xf32>
    %cst_14 = arith.constant dense<0.000000e+00> : vector<4x8xf32>
    %16 = tpu.matmul %15, %14, %cst_14 {dimension_numbers = #tpu.dot_dimension_numbers<[1], [0], [0], [1], [0, 0, 1, 1], [], []>} : vector<4x16xf32>, vector<16x8xf32>, vector<4x8xf32> -> vector<4x8xf32>
    %c0_15 = arith.constant 0 : index
    %c0_16 = arith.constant 0 : index
    %17 = vector.load %arg7[%c0_15, %c0_16] : memref<4x1xf32, #tpu.memory_space<vmem>>, vector<4x1xf32>
    %18 = vector.broadcast %17 : vector<4x1xf32> to vector<4x8xf32>
    %19 = arith.addf %16, %18 : vector<4x8xf32>
    %cst_17 = arith.constant 0.000000e+00 : f32
    %20 = vector.broadcast %cst_17 : f32 to vector<4x8xf32>
    %21 = arith.maximumf %19, %20 : vector<4x8xf32>
    %c0_18 = arith.constant 0 : index
    %c0_19 = arith.constant 0 : index
    %22 = vector.load %arg8[%c0_18, %c0_19] : memref<1x4xf32, #tpu.memory_space<vmem>>, vector<1x4xf32>
    %cst_20 = arith.constant dense<0.000000e+00> : vector<1x8xf32>
    %23 = tpu.matmul %22, %21, %cst_20 {dimension_numbers = #tpu.dot_dimension_numbers<[1], [0], [0], [1], [0, 0, 1, 1], [], []>} : vector<1x4xf32>, vector<4x8xf32>, vector<1x8xf32> -> vector<1x8xf32>
    %c0_21 = arith.constant 0 : index
    %c0_22 = arith.constant 0 : index
    %24 = vector.load %arg9[%c0_21, %c0_22] : memref<1x1xf32, #tpu.memory_space<vmem>>, vector<1x1xf32>
    %25 = vector.broadcast %24 : vector<1x1xf32> to vector<1x8xf32>
    %26 = arith.addf %23, %25 : vector<1x8xf32>
    %c0_23 = arith.constant 0 : index
    %c0_24 = arith.constant 0 : index
    %27 = vector.load %arg10[%c0_23, %c0_24] : memref<1x8xf32, #tpu.memory_space<vmem>>, vector<1x8xf32>
    tpu.vector_store %arg10[%c0_23, %c0_24], %26 {strides = array<i32>} : memref<1x8xf32, #tpu.memory_space<vmem>>, vector<1x8xf32>,
    return
  }
  func.func @transform_0(%arg0: i32) -> (i32, i32) {
    %c0_i32 = arith.constant 0 : i32
    %c0_i32_0 = arith.constant 0 : i32
    return %arg0, %c0_i32 : i32, i32
  }
  func.func @transform_1(%arg0: i32) -> (i32, i32) {
    %c0_i32 = arith.constant 0 : i32
    %c0_i32_0 = arith.constant 0 : i32
    %c0_i32_1 = arith.constant 0 : i32
    return %c0_i32, %c0_i32_0 : i32, i32
  }
  func.func @transform_2(%arg0: i32) -> (i32, i32) {
    %c0_i32 = arith.constant 0 : i32
    %c0_i32_0 = arith.constant 0 : i32
    %c0_i32_1 = arith.constant 0 : i32
    return %c0_i32, %c0_i32_0 : i32, i32
  }
  func.func @transform_3(%arg0: i32) -> (i32, i32) {
    %c0_i32 = arith.constant 0 : i32
    %c0_i32_0 = arith.constant 0 : i32
    %c0_i32_1 = arith.constant 0 : i32
    return %c0_i32, %c0_i32_0 : i32, i32
  }
  func.func @transform_4(%arg0: i32) -> (i32, i32) {
    %c0_i32 = arith.constant 0 : i32
    %c0_i32_0 = arith.constant 0 : i32
    %c0_i32_1 = arith.constant 0 : i32
    return %c0_i32, %c0_i32_0 : i32, i32
  }
  func.func @transform_5(%arg0: i32) -> (i32, i32) {
    %c0_i32 = arith.constant 0 : i32
    %c0_i32_0 = arith.constant 0 : i32
    %c0_i32_1 = arith.constant 0 : i32
    return %c0_i32, %c0_i32_0 : i32, i32
  }
  func.func @transform_6(%arg0: i32) -> (i32, i32) {
    %c0_i32 = arith.constant 0 : i32
    %c0_i32_0 = arith.constant 0 : i32
    %c0_i32_1 = arith.constant 0 : i32
    return %c0_i32, %c0_i32_0 : i32, i32
  }
  func.func @transform_7(%arg0: i32) -> (i32, i32) {
    %c0_i32 = arith.constant 0 : i32
    %c0_i32_0 = arith.constant 0 : i32
    %c0_i32_1 = arith.constant 0 : i32
    return %c0_i32, %c0_i32_0 : i32, i32
  }
  func.func @transform_8(%arg0: i32) -> (i32, i32) {
    %c0_i32 = arith.constant 0 : i32
    %c0_i32_0 = arith.constant 0 : i32
    %c0_i32_1 = arith.constant 0 : i32
    return %c0_i32, %c0_i32_0 : i32, i32
  }
  func.func @transform_9(%arg0: i32) -> (i32, i32) {
    %c0_i32 = arith.constant 0 : i32
    %c0_i32_0 = arith.constant 0 : i32
    return %c0_i32, %arg0 : i32, i32
  }
}

</mosaic_0001>

<bundles_post_ra>
// kernel: tpu_custom_call.1
= control target key start
LH: loop header
LB: loop body
LE: loop exit
PB: predicated region body
PF: predicated region fallthrough
CT: control target
= control target key end

     0   :  { %s679_s0 = inlined_call_operand.vmem [shape: f32[8,16], index: 0, kind: input, shape index: {}]   ;;  %s680_s1 = inlined_call_operand.vmem [shape: f32[32,16], index: 1, kind: input, shape index: {}]   ;;  %s681_s2 = inlined_call_operand.vmem [shape: f32[32,1], index: 2, kind: input, shape index: {}]   ;;  %s682_s3 = inlined_call_operand.vmem [shape: f32[16,32], index: 3, kind: input, shape index: {}]   ;;  %s683_s4 = inlined_call_operand.vmem [shape: f32[16,1], index: 4, kind: input, shape index: {}]   ;;  %s684_s5 = inlined_call_operand.vmem [shape: f32[4,16], index: 5, kind: input, shape index: {}]   ;;  %s685_s6 = inlined_call_operand.vmem [shape: f32[4,1], index: 6, kind: input, shape index: {}]   ;;  %s686_s7 = inlined_call_operand.vmem [shape: f32[1,4], index: 7, kind: input, shape index: {}]   ;;  %s687_s8 = inlined_call_operand.<no memory space> [shape: f32[1,1], index: 8, kind: input, shape index: {}]   ;;  %s688_s9 = inlined_call_operand.hbm [shape: f32[1,8], index: 9, kind: output, shape index: {}]  }
   0x1   :  { %v14_v0 = vstv %s687_s8 }
   0x2   :  { %15 = vst [vmem:[#allocation2] sm:$0x1] %v14_v0 }
   0x3   :  { %v39_v1 = vld [vmem:[%s679_s0] sm:$0xff]  ;;  %vm64_vm0 = vcmask 130048   ;;  %v36_v4 = vld [vmem:[%s680_s1 + $0x8] sm:$0xff]  ;;  %v552_v5 = vmov 0   ;;  %v42_v6 = vld [vmem:[%s681_s2 + $0x10] sm:$0xff] }
   0x4   :  { %v35_v2 = vld [vmem:[%s680_s1] sm:$0xff]  ;;  %479 = vmatprep.subr.msk.mxu0 %vm64_vm0, %v39_v1  ;;  %526 = vset.pattern.permute.xlu0 %v552_v5  ;;  %v37_v7 = vld [vmem:[%s680_s1 + $0x10] sm:$0xff]  ;;  %v41_v8 = vld [vmem:[%s681_s2 + $0x8] sm:$0xff] }
   0x5   :  { %481 = vmatprep.mubr.msk.f32.mxu0 %vm64_vm0, %v35_v2  ;;  %v40_v3 = vld [vmem:[%s681_s2] sm:$0xff]  ;;  %480 = vmatpush3.xpose.msk.msra.mxu0 %vm64_vm0, %v39_v1 }
   0x6   :  { %46 = vperm.xlu0 %526, %v40_v3   ;;  %527 = vset.pattern.permute.xlu1 %v552_v5 }
   0x7   :  { %56 = vperm.xlu1 %527, %v42_v6  }
   0x8   :  { %16 = vsyncpa [#allocation4], 0  ;;  %482 = vmatmul.mubr.msk.f32.vlgmr.msra.gmra.mrb[0].mxu0 %vm64_vm0, %v36_v4  ;;  %v43_v9 = vld [vmem:[%s681_s2 + $0x18] sm:$0xff]  ;;  %v171_v11 = vld [vmem:[%s683_s4] sm:$0xff]  ;;  %vm183_vm1 = vcmask 261120   ;;  %v553_v35 = vmov 0.0|0.0   ;;  %v355_v53 = vlaneseq }
   0x9   :  { %484 = vmatprep.mubr.msk.f32.mxu0 %vm64_vm0, %v37_v7  ;;  %v38_v10 = vld [vmem:[%s680_s1 + $0x18] sm:$0xff]  ;;  %v172_v12 = vld [vmem:[%s683_s4 + $0x8] sm:$0xff]  ;;  %v268_v13 = vld [vmem:[%s685_s6] sm:$0xf]  ;;  %518 = vmatprep.subr.bf16.mxu0 %v553_v35  ;;  %vm554_vm2 = vmmov 0   ;;  %v555_v36 = vmov 0.0  }
   0xa   :  { %51 = vperm.xlu0 %526, %v41_v8   ;;  %v349_v14 = vld [vmem:[#allocation2] sm:$0x1]  ;;  %v170_v34 = vld [vmem:[%s682_s3 + $0x8] sm:$0xff]  ;;  %vm363_vm3 = vcmask 1043456   ;;  %vm359_vm4 = vcmask 31744   ;;  %v356_v54 = vshrl.u32 %v355_v53, 7 }
   0xb   :  { %61 = vperm.xlu1 %527, %v43_v9   ;;  %v169_v15 = vld [vmem:[%s682_s3] sm:$0xff]  ;;  %vm437_vm5 = vcmask 57344  }
   0xc   :  { %485 = vmatmul.mubr.msk.f32.gmra.mrb[2].mxu0 %vm64_vm0, %v38_v10  ;;  %495 = vmatprep.mubr.msk.f32.mxu1 %vm183_vm1, %v169_v15  ;;  %v267_v46 = vld [vmem:[%s684_s5] sm:$0xf]  ;;  %v357_v55 = vsub.s32 0, %v356_v54  ;;  %s556_s5 = smov [#allocation3]  }
   0xd   :  { %502 = vmatprep.mubr.msk.f32.mxu0 %vm554_vm2, %v555_v36  ;;  %v348_v52 = vld [vmem:[%s686_s7] sm:$0x1]  ;;  %s445_s15 = sshll.u32 %s556_s5, 4  ;;  %s446_s15 = int_to_ptr.vmem [resolvable:$true] %s445_s15 }
   0xe   :  { %175 = vperm.xlu0 %526, %v171_v11   ;;  %s528_s16 = scalar_lea.vmem %s446_s15, 16  ;;  %s532_s8 = scalar_lea.vmem %s446_s15, 32 }
   0xf   :  { %180 = vperm.xlu1 %527, %v172_v12   ;;  %p529_p0 = scmp.ne.s32.totalorder %s446_s15, %s528_s16  ;;  %p533_p1 = scmp.lt.s32.totalorder %s446_s15, %s446_s15 }
  0x10   :  { %p534_p2 = scmp.lt.s32.totalorder %s532_s8, %s528_s16 }
  0x12   :  { %271 = vperm.xlu0 %526, %v268_v13   ;;  %p535_p3 = por %p534_p2, %p533_p1 }
  0x13   :  { %352 = vperm.xlu1 %527, %v349_v14  }
  0x14   :  { %p536_p4 = pnand %p535_p3, %p529_p0 }
  0x85   :  { %v47_v16 = vpop.permute.xlu0 %46 }
  0x86   :  { %v57_v17 = vpop.permute.xlu1 %56 }
  0x89   :  { %v52_v18 = vpop.permute.xlu0 %51 }
  0x8a   :  { %v62_v24 = vpop.permute.xlu1 %61 }
  0x8d   :  { %v176_v39 = vpop.permute.xlu0 %175 }
  0x8e   :  { %v181_v37 = vpop.permute.xlu1 %180 }
  0x91   :  { %v272_v47 = vpop.permute.xlu0 %271 }
  0x92   :  { %v353_v56 = vpop.permute.xlu1 %352 }
  0x93   :  { %v358_v57 = vrot.slane %v353_v56, %v357_v55 }
  0xdb   :  { %v483_v19 = vpop.f32.mrb[0].mxu0 }
  0xdc   :  { %v152_v20 = vadd.f32 %v483_v19, %v52_v18  ;;  %v146_v21 = vpop.f32.mrb[1].mxu0 }
  0xdd   :  { %v147_v22 = vadd.f32 %v146_v21, %v47_v16 }
  0xde   :  { %v166_v23 = vmax.f32 %v152_v20, 0.0 }
  0xdf   :  { %v165_v25 = vmax.f32 %v147_v22, 0.0  ;;  %v486_v26 = vpop.f32.mrb[2].mxu0 }
  0xe0   :  { %v162_v27 = vadd.f32 %v486_v26, %v62_v24  ;;  %v156_v28 = vpop.f32.mrb[3].mxu0 }
  0xe1   :  { %v157_v29 = vadd.f32 %v156_v28, %v57_v17  ;;  %v510_v30 = vpack.c.bf16 %v166_v23, %v165_v25 }
  0xe2   :  { %v168_v31 = vmax.f32 %v162_v27, 0.0 }
  0xe3   :  { %v167_v32 = vmax.f32 %v157_v29, 0.0  ;;  %511 = vmatprep.subr.bf16.mxu1 %v510_v30 }
  0xe4   :  { %513 = vmatpush3.bf16.msra.mxu1 %v510_v30 }
  0xe5   :  { %v514_v33 = vpack.c.bf16 %v168_v31, %v167_v32 }
  0xe7   :  { %515 = vmatprep.subr.bf16.mxu1 %v514_v33 }
  0xe8   :  { %517 = vmatpush3.bf16.msra.mxu1 %v514_v33 }
  0xe9   :  { %505 = vmatprep.subr.mxu1 %v555_v36 }
  0xeb   :  { %496 = vmatmul.mubr.msk.f32.vlgmr.msra.gmra.mrb[0].mxu1 %vm183_vm1, %v170_v34 }
  0xec   :  { %507 = vmatprep.mubr.msk.f32.mxu1 %vm554_vm2, %v555_v36 }
 0x1be   :  { %v497_v38 = vpop.f32.mrb[0].mxu1 }
 0x1bf   :  { %v262_v40 = vadd.f32 %v497_v38, %v181_v37  ;;  %v256_v41 = vpop.f32.mrb[1].mxu1 }
 0x1c0   :  { %v257_v42 = vadd.f32 %v256_v41, %v176_v39 }
 0x1c1   :  { %v266_v43 = vmax.f32 %v262_v40, 0.0 }
 0x1c2   :  { %v265_v44 = vmax.f32 %v257_v42, 0.0 }
 0x1c4   :  { %v519_v45 = vpack.c.bf16 %v266_v43, %v265_v44 }
 0x1c6   :  { %520 = vmatpush3.bf16.msra.mxu0 %v519_v45 }
 0x1c9   :  { %503 = vmatmul.mubr.msk.f32.vlgmr.msra.gmra.mrb[4].mxu0 %vm64_vm0, %v267_v46 }
 0x29c   :  { %v343_v48 = vpop.f32.mrb[4].mxu0 }
 0x29d   :  { %v344_v49 = vadd.f32 %v343_v48, %v272_v47  ;;  %v504_v50 = vpop.f32.mrb[5].mxu0 }
 0x29f   :  { %v347_v51 = vmax.f32 %v344_v49, 0.0 }
 0x2a1   :  { %506 = vmatpush3.msk.msra.mxu1 %vm363_vm3, %v347_v51 }
 0x2a2   :  { %508 = vmatmul.mubr.msk.f32.vlgmr.msra.gmra.mrb[2].mxu1 %vm359_vm4, %v348_v52 }
 0x375   :  { %v433_v58 = vpop.f32.mrb[2].mxu1 }
 0x376   :  { %v434_v59 = vadd.f32 %v433_v58, %v358_v57  ;;  %v509_v60 = vpop.f32.mrb[3].mxu1 }
 0x378   :  { %438 = vst.msk [vmem:[#allocation3] sm:$0x1] %vm437_vm5, %v434_v59 }
 0x379   :  { %539 = shalt.err (!%p536_p4)
}
 0x37a   :  { %s540_s0 = scalar_lea.hbm %s688_s9, 16 }
 0x37b   :  { %p541_p5 = scmp.ne.s32.totalorder %s688_s9, %s540_s0  ;;  %p544_p6 = scmp.lt.u32.totalorder %s540_s0, %s688_s9 }
 0x37d   :  { %p546_p7 = pnand %p544_p6, %p541_p5 }
 0x37f   :  { %549 = shalt.err (!%p546_p7)
}
 0x380   :  { %448 = dma.vmem_to_hbm [thread:$0]  %s446_s15, 16, %s688_s9, [#allocation4]  }
 0x381   :  { %550 = dma.done.wait [#allocation4], 16  }
 0x382   :  { %551 = vsyncadd [#allocation4], 4294967280 }
 0x383   :  { %452 = vsyncpa [#allocation4], 1 }

</bundles_post_ra>
